<compile_context>
chip_gen: v7x
topology: tpu7x:2x2x1
jax: 0.10.0
libtpu: 0.0.40
codegen_flags: <defaults>
</compile_context>

<pallas_src>
import functools

import jax
import jax.numpy as jnp
from jax.experimental import pallas as pl
from jax.experimental.pallas import tpu as pltpu

_LANE = 128
_PAD_Z = 100.0   # padded elements get z=+100 -> pt==1, weight==0, loss==0


def _cdiv(a, b):
    return -(-a // b)


def _round_up(a, b):
    return _cdiv(a, b) * b


def _tensorcores_per_chip():
    """2 on v7x (two TensorCores per chip), 1 on v5e/v6e (and anything else)."""
    try:
        kind = jax.devices()[0].device_kind
    except Exception:  # pragma: no cover - defensive
        return 1
    return 2 if "7" in kind else 1


def _focal_loss_kernel(d_ref, t_ref, out_ref, *, gamma, alpha, inner_axis):
    """One (BR, 128) tile of the focal loss, folded into an (8,128) accumulator.

    d_ref:   (BR, 128) f32/bf16 -- class-0 logit minus class-1 logit
    t_ref:   (BR, 128) int8     -- targets in {0, 1} (0 in the padded tail)
    out_ref: (8, 128)  f32      -- per-core per-lane partial sums (resident)
    """
    step = pl.program_id(inner_axis)

    @pl.when(step == 0)
    def _():
        out_ref[...] = jnp.zeros_like(out_ref)

    d = d_ref[...].astype(jnp.float32)               # (BR, 128)
    tf = t_ref[...].astype(jnp.float32)              # 0.0 / 1.0

    # z = (logit of the target class) - (logit of the other class)
    z = d * (1.0 - 2.0 * tf)

    e = jnp.exp(-jnp.abs(z))                         # EUP exp
    lg = jnp.log1p(e)                                # EUP log
    logpt = -(jnp.maximum(-z, 0.0) + lg)             # log softmax[target]
    log_one_m_pt = -(jnp.maximum(z, 0.0) + lg)       # log(1 - pt), stable

    # (1-pt)**gamma is computed from log(1-pt) BEFORE alpha (matches PyTorch).
    if gamma == 0.0:
        w = jnp.ones_like(z)
    else:
        w = jnp.exp(jnp.float32(gamma) * log_one_m_pt)   # EUP exp

    if alpha is not None:
        a0, a1 = alpha
        logpt = logpt * (a0 + (a1 - a0) * tf)        # alpha[target], no gather

    loss = -w * logpt                                # (BR, 128), >= 0

    # Fold BR rows into 8 sublanes: layout-preserving reshape + pure VPU adds.
    br = loss.shape[0]
    out_ref[...] += loss.reshape(br // 8, 8, _LANE).sum(axis=0)


def focal_loss(logits, target, *, gamma=0.5, alpha=None, size_average=False,
               block_rows=None):
    """Pallas implementation of FocalLoss.forward.

    logits: (B, N, 2) float, target: (B, N) int in {0, 1}.
    Returns a scalar (sum over all B*N anchors, or mean if size_average).
    """
    B, N, C = logits.shape
    assert C == 2, "FocalLoss reference hard-codes 2 classes (view(-1, 2))"
    T = B * N

    # --- static tiling decisions ------------------------------------------
    rows0 = _cdiv(T, _LANE)
    BR = 1024 if block_rows is None else int(block_rows)
    BR = max(32, _round_up(min(BR, _round_up(rows0, 32)), 32))   # 32: int8 tile
    tiles = _cdiv(rows0, BR)

    cores = _tensorcores_per_chip()
    use_core_parallel = (cores >= 2 and tiles >= 2
                         and hasattr(pltpu, "CORE_PARALLEL"))
    P = 2 if use_core_parallel else 1
    tiles = _round_up(tiles, P)
    rows = tiles * BR
    tpc = tiles // P
    pad = rows * _LANE - T

    # --- single layout pass: class difference (input dtype) + int8 targets --
    x = logits.reshape(T, 2)
    d = x[:, 0] - x[:, 1]                                         # (T,)
    d = jnp.pad(d, (0, pad), constant_values=_PAD_Z).reshape(rows, _LANE)
    t = jnp.pad(target.reshape(T).astype(jnp.int8), (0, pad)).reshape(
        rows, _LANE)

    if alpha is None:
        alpha_pair = None
    elif isinstance(alpha, (float, int)):
        alpha_pair = (float(alpha), 1.0 - float(alpha))
    else:
        # static python list/tuple of 2 floats (mirrors torch.Tensor(alpha));
        # keep it static to avoid host syncs on traced arrays.
        alpha_pair = (float(alpha[0]), float(alpha[1]))

    kernel = functools.partial(
        _focal_loss_kernel, gamma=float(gamma), alpha=alpha_pair,
        inner_axis=(1 if P == 2 else 0))

    if P == 2:
        grid = (P, tpc)
        in_specs = [
            pl.BlockSpec((BR, _LANE), lambda p, i: (p * tpc + i, 0)),
            pl.BlockSpec((BR, _LANE), lambda p, i: (p * tpc + i, 0)),
        ]
        out_spec = pl.BlockSpec((8, _LANE), lambda p, i: (p, 0))
        dim_sem = (pltpu.CORE_PARALLEL, pltpu.ARBITRARY)
    else:
        grid = (tpc,)
        in_specs = [
            pl.BlockSpec((BR, _LANE), lambda i: (i, 0)),
            pl.BlockSpec((BR, _LANE), lambda i: (i, 0)),
        ]
        out_spec = pl.BlockSpec((8, _LANE), lambda i: (0, 0))
        dim_sem = ("arbitrary",)

    partial_sums = pl.pallas_call(
        kernel,
        out_shape=jax.ShapeDtypeStruct((P * 8, _LANE), jnp.float32),
        grid=grid,
        in_specs=in_specs,
        out_specs=out_spec,
        compiler_params=pltpu.CompilerParams(dimension_semantics=dim_sem),
    )(d, t)

    loss = jnp.sum(partial_sums)          # tiny (P*8, 128) reduce, done by XLA
    if size_average:
        loss = loss / jnp.float32(T)
    return loss


def _focal_loss_ref(logits, target, *, gamma=0.5, alpha=None,
                    size_average=False):
    """Pure-JAX reference mirroring the PyTorch module."""
    t = target.reshape(-1).astype(jnp.int32)
    logpt_all = jax.nn.log_softmax(logits.astype(jnp.float32), axis=2)
    logpt_all = logpt_all.reshape(-1, 2)
    logpt = jnp.take_along_axis(logpt_all, t[:, None], axis=1)[:, 0]
    pt = jnp.exp(logpt)
    if alpha is not None:
        if isinstance(alpha, (float, int)):
            a = jnp.array([alpha, 1.0 - alpha], jnp.float32)
        else:
            a = jnp.asarray(alpha, jnp.float32)
        logpt = logpt * a[t]
    loss = -1.0 * (1.0 - pt) ** gamma * logpt
    return loss.mean() if size_average else loss.sum()


if __name__ == "__main__":
    key = jax.random.PRNGKey(0)
    k1, k2, k3, k4 = jax.random.split(key, 4)

    # --- default module config: gamma=0.5, alpha=None, size_average=False ---
    B, N = 2, 512
    logits = jax.random.normal(k1, (B, N, 2), dtype=jnp.float32)
    target = jax.random.randint(k2, (B, N), 0, 2, dtype=jnp.int32)

    out = focal_loss(logits, target, gamma=0.5, alpha=None, size_average=False)
    out = jax.block_until_ready(out)
    ref = _focal_loss_ref(logits, target, gamma=0.5, alpha=None,
                          size_average=False)
    assert jnp.allclose(out, ref, rtol=1e-4, atol=1e-4), (out, ref)

    # --- exercise multi-tile grid + ragged tail (zero-loss padding) ---------
    B2, N2 = 2, 8732  # SSD anchor count -> ragged vs. 128-lane tiles
    logits2 = jax.random.normal(k3, (B2, N2, 2), dtype=jnp.float32)
    target2 = jax.random.randint(k4, (B2, N2), 0, 2, dtype=jnp.int32)

    out2 = focal_loss(logits2, target2, gamma=0.5, alpha=None,
                      size_average=False, block_rows=64)
    out2 = jax.block_until_ready(out2)
    ref2 = _focal_loss_ref(logits2, target2, gamma=0.5, alpha=None,
                           size_average=False)
    assert jnp.allclose(out2, ref2, rtol=1e-4, atol=1e-3), (out2, ref2)

    # --- alpha weighting + size_average path --------------------------------
    out3 = focal_loss(logits, target, gamma=0.5, alpha=0.25, size_average=True)
    out3 = jax.block_until_ready(out3)
    ref3 = _focal_loss_ref(logits, target, gamma=0.5, alpha=0.25,
                           size_average=True)
    assert jnp.allclose(out3, ref3, rtol=1e-4, atol=1e-5), (out3, ref3)

    print("KERNEL_OK")
</pallas_src>

<mosaic_0001>
module attributes {stable_mosaic.version = 11 : i64} {
  func.func @_focal_loss_kernel(%arg0: i32, %arg1: memref<32x128xf32, #tpu.memory_space<vmem>>, %arg2: memref<32x128xi8, #tpu.memory_space<vmem>>, %arg3: memref<8x128xf32, #tpu.memory_space<vmem>>) attributes {dimension_semantics = [#tpu.dimension_semantics<arbitrary>], iteration_bounds = array<i64: 1>, scalar_prefetch = 0 : i64, scratch_operands = 0 : i64, tpu.core_type = #tpu.core_type<tc>, window_params = [{transform_indices = @transform_0, window_bounds = array<i64: 32, 128>}, {transform_indices = @transform_1, window_bounds = array<i64: 32, 128>}, {pipeline_mode = #tpu.pipeline_mode<synchronous>, transform_indices = @transform_2, window_bounds = array<i64: 8, 128>}]} {
    %c0_i32 = arith.constant 0 : i32
    %0 = arith.cmpi eq, %arg0, %c0_i32 : i32
    %1 = arith.extui %0 : i1 to i32
    %c0_i32_0 = arith.constant 0 : i32
    %2 = arith.cmpi ne, %1, %c0_i32_0 : i32
    scf.if %2 {
      %cst_18 = arith.constant 0.000000e+00 : f32
      %39 = vector.broadcast %cst_18 : f32 to vector<8x128xf32>
      %c0_19 = arith.constant 0 : index
      %c0_20 = arith.constant 0 : index
      %40 = vector.load %arg3[%c0_19, %c0_20] : memref<8x128xf32, #tpu.memory_space<vmem>>, vector<8x128xf32>
      tpu.vector_store %arg3[%c0_19, %c0_20], %39 {strides = array<i32>} : memref<8x128xf32, #tpu.memory_space<vmem>>, vector<8x128xf32>,
    } else {
    }
    %c0 = arith.constant 0 : index
    %c0_1 = arith.constant 0 : index
    %3 = vector.load %arg1[%c0, %c0_1] : memref<32x128xf32, #tpu.memory_space<vmem>>, vector<32x128xf32>
    %c0_2 = arith.constant 0 : index
    %c0_3 = arith.constant 0 : index
    %4 = vector.load %arg2[%c0_2, %c0_3] : memref<32x128xi8, #tpu.memory_space<vmem>>, vector<32x128xi8>
    %5 = arith.sitofp %4 : vector<32x128xi8> to vector<32x128xf32>
    %cst = arith.constant 2.000000e+00 : f32
    %6 = vector.broadcast %cst : f32 to vector<32x128xf32>
    %7 = arith.mulf %6, %5 : vector<32x128xf32>
    %cst_4 = arith.constant 1.000000e+00 : f32
    %8 = vector.broadcast %cst_4 : f32 to vector<32x128xf32>
    %9 = arith.subf %8, %7 : vector<32x128xf32>
    %10 = arith.mulf %3, %9 : vector<32x128xf32>
    %11 = math.absf %10 : vector<32x128xf32>
    %cst_5 = arith.constant 0.000000e+00 : f32
    %12 = vector.broadcast %cst_5 : f32 to vector<32x128xf32>
    %13 = arith.subf %12, %11 : vector<32x128xf32>
    %14 = math.exp %13 : vector<32x128xf32>
    %15 = math.log1p %14 : vector<32x128xf32>
    %cst_6 = arith.constant 0.000000e+00 : f32
    %16 = vector.broadcast %cst_6 : f32 to vector<32x128xf32>
    %17 = arith.subf %16, %10 : vector<32x128xf32>
    %cst_7 = arith.constant 0.000000e+00 : f32
    %18 = vector.broadcast %cst_7 : f32 to vector<32x128xf32>
    %19 = arith.maximumf %17, %18 : vector<32x128xf32>
    %20 = arith.addf %19, %15 : vector<32x128xf32>
    %cst_8 = arith.constant 0.000000e+00 : f32
    %21 = vector.broadcast %cst_8 : f32 to vector<32x128xf32>
    %22 = arith.subf %21, %20 : vector<32x128xf32>
    %cst_9 = arith.constant 0.000000e+00 : f32
    %23 = vector.broadcast %cst_9 : f32 to vector<32x128xf32>
    %24 = arith.maximumf %10, %23 : vector<32x128xf32>
    %25 = arith.addf %24, %15 : vector<32x128xf32>
    %cst_10 = arith.constant 0.000000e+00 : f32
    %26 = vector.broadcast %cst_10 : f32 to vector<32x128xf32>
    %27 = arith.subf %26, %25 : vector<32x128xf32>
    %cst_11 = arith.constant 5.000000e-01 : f32
    %28 = vector.broadcast %cst_11 : f32 to vector<32x128xf32>
    %29 = arith.mulf %28, %27 : vector<32x128xf32>
    %30 = math.exp %29 : vector<32x128xf32>
    %cst_12 = arith.constant 0.000000e+00 : f32
    %31 = vector.broadcast %cst_12 : f32 to vector<32x128xf32>
    %32 = arith.subf %31, %30 : vector<32x128xf32>
    %33 = arith.mulf %32, %22 : vector<32x128xf32>
    %c0_13 = arith.constant 0 : index
    %c0_14 = arith.constant 0 : index
    %34 = vector.load %arg3[%c0_13, %c0_14] : memref<8x128xf32, #tpu.memory_space<vmem>>, vector<8x128xf32>
    %35 = vector.shape_cast %33 : vector<32x128xf32> to vector<4x8x128xf32>
    %cst_15 = arith.constant dense<0.000000e+00> : vector<8x128xf32>
    %36 = vector.multi_reduction <add>, %35, %cst_15 [0] : vector<4x8x128xf32> to vector<8x128xf32>
    %37 = arith.addf %34, %36 : vector<8x128xf32>
    %c0_16 = arith.constant 0 : index
    %c0_17 = arith.constant 0 : index
    %38 = vector.load %arg3[%c0_16, %c0_17] : memref<8x128xf32, #tpu.memory_space<vmem>>, vector<8x128xf32>
    tpu.vector_store %arg3[%c0_16, %c0_17], %37 {strides = array<i32>} : memref<8x128xf32, #tpu.memory_space<vmem>>, vector<8x128xf32>,
    return
  }
  func.func @transform_0(%arg0: i32) -> (i32, i32) {
    %c0_i32 = arith.constant 0 : i32
    %c0_i32_0 = arith.constant 0 : i32
    return %arg0, %c0_i32 : i32, i32
  }
  func.func @transform_1(%arg0: i32) -> (i32, i32) {
    %c0_i32 = arith.constant 0 : i32
    %c0_i32_0 = arith.constant 0 : i32
    return %arg0, %c0_i32 : i32, i32
  }
  func.func @transform_2(%arg0: i32) -> (i32, i32) {
    %c0_i32 = arith.constant 0 : i32
    %c0_i32_0 = arith.constant 0 : i32
    %c0_i32_1 = arith.constant 0 : i32
    return %c0_i32, %c0_i32_0 : i32, i32
  }
}

</mosaic_0001>

<bundles_post_ra>
// kernel: tpu_custom_call.1
= control target key start
LH: loop header
LB: loop body
LE: loop exit
PB: predicated region body
PF: predicated region fallthrough
CT: control target
= control target key end

     0   :  { %7 = vsyncpa [#allocation3], 0  ;;  %s368_s0 = inlined_call_operand.hbm [shape: f32[32,128], index: 0, kind: input, shape index: {}]   ;;  %s369_s1 = inlined_call_operand.hbm [shape: s8[32,128], index: 1, kind: input, shape index: {}]   ;;  %s370_s2 = inlined_call_operand.hbm [shape: f32[8,128], index: 2, kind: output, shape index: {}]  }
   0x1   :  { %8 = vsyncpa [#allocation6], 0 }
   0x2   :  { %9 = vsyncpa [#allocation4], 0  ;;  %s292_s9 = smov [#allocation2]   ;;  %s220_s13 = scalar_lea.hbm %s368_s0, 512 }
   0x3   :  { %s15_s10 = sshll.u32 %s292_s9, 4  ;;  %p221_p0 = scmp.ne.s32.totalorder %s368_s0, %s220_s13  ;;  %s16_s10 = int_to_ptr.vmem [resolvable:$true] %s15_s10 }
   0x4   :  { %p224_p1 = scmp.lt.u32.totalorder %s220_s13, %s368_s0 }
   0x6   :  { %p226_p2 = pnand %p224_p1, %p221_p0 }
   0x8   :  { %229 = shalt.err (!%p226_p2)
}
   0x9   :  { %s230_s18 = scalar_lea.vmem %s16_s10, 512  ;;  %p235_p4 = scmp.lt.s32.totalorder %s16_s10, %s16_s10 }
   0xa   :  { %p231_p3 = scmp.ne.s32.totalorder %s16_s10, %s230_s18  ;;  %p236_p5 = scmp.lt.s32.totalorder %s230_s18, %s230_s18 }
   0xc   :  { %p237_p6 = por %p236_p5, %p235_p4 }
   0xe   :  { %p238_p7 = pnand %p237_p6, %p231_p3 }
  0x10   :  { %241 = shalt.err (!%p238_p7)
}
  0x11   :  { %s293_s19 = smov 128   ;;  %s294_s20 = smov 8  }
  0x12   :  { %21 = dma.hbm_to_vmem [thread:$0]  %s368_s0, 512, %s16_s10, [#allocation3], %s293_s19, %s293_s19, %s294_s20  }
  0x13   :  { %s295_s23 = smov [#allocation5]   ;;  %s242_s27 = scalar_lea.hbm %s369_s1, 128 }
  0x14   :  { %s28_s24 = sshll.u32 %s295_s23, 4  ;;  %p243_p8 = scmp.ne.s32.totalorder %s369_s1, %s242_s27  ;;  %s29_s24 = int_to_ptr.vmem [resolvable:$true] %s28_s24 }
  0x15   :  { %p246_p9 = scmp.lt.u32.totalorder %s242_s27, %s369_s1 }
  0x17   :  { %p248_p10 = pnand %p246_p9, %p243_p8 }
  0x19   :  { %251 = shalt.err (!%p248_p10)
}
  0x1a   :  { %s252_s4 = scalar_lea.vmem %s29_s24, 128  ;;  %p257_p12 = scmp.lt.s32.totalorder %s29_s24, %s29_s24 }
  0x1b   :  { %p253_p11 = scmp.ne.s32.totalorder %s29_s24, %s252_s4  ;;  %p258_p13 = scmp.lt.s32.totalorder %s252_s4, %s252_s4 }
  0x1d   :  { %p259_p0 = por %p258_p13, %p257_p12 }
  0x1f   :  { %p260_p1 = pnand %p259_p0, %p253_p11 }
  0x21   :  { %263 = shalt.err (!%p260_p1)
}
  0x22   :  { %31 = dma.hbm_to_vmem [thread:$0]  %s369_s1, 128, %s29_s24, [#allocation6]  }
  0x23   :  { %286 = dma.done.wait [#allocation3], 512  }
  0x24   :  { %287 = vsyncadd [#allocation3], 4294966784 }
  0x25   :  { %288 = dma.done.wait [#allocation6], 128  }
  0x26   :  { %289 = vsyncadd [#allocation6], 4294967168  ;;  %v47_v0 = vld [vmem:[#allocation5] sm:$0xff]  ;;  %v44_v14 = vld [vmem:[#allocation2 + $0x8] sm:$0xff]  ;;  %s296_s1 = smov [#allocation7]  }
  0x27   :  { %v48_v1 = vunpack.c.0.s8 %v47_v0  ;;  %v49_v2 = vunpack.c.1.s8 %v47_v0  ;;  %v50_v3 = vunpack.c.2.s8 %v47_v0  ;;  %v51_v4 = vunpack.c.3.s8 %v47_v0  ;;  %v43_v9 = vld [vmem:[#allocation2] sm:$0xff]  ;;  %v45_v15 = vld [vmem:[#allocation2 + $0x10] sm:$0xff]  ;;  %v46_v16 = vld [vmem:[#allocation2 + $0x18] sm:$0xff]  ;;  %s180_s6 = sshll.u32 %s296_s1, 4  ;;  %s181_s6 = int_to_ptr.vmem [resolvable:$true] %s180_s6 }
  0x28   :  { %s264_s7 = scalar_lea.vmem %s181_s6, 128  ;;  %p269_p3 = scmp.lt.s32.totalorder %s181_s6, %s181_s6 }
  0x29   :  { %v52_v5 = vcvt.s32.f32 %v48_v1  ;;  %v53_v6 = vcvt.s32.f32 %v49_v2  ;;  %v54_v7 = vcvt.s32.f32 %v50_v3  ;;  %v55_v8 = vcvt.s32.f32 %v51_v4  ;;  %p265_p2 = scmp.ne.s32.totalorder %s181_s6, %s264_s7  ;;  %p270_p4 = scmp.lt.s32.totalorder %s264_s7, %s264_s7 }
  0x2b   :  { %v56_v10 = vmul.f32 2.0, %v52_v5  ;;  %v57_v11 = vmul.f32 2.0, %v53_v6  ;;  %v58_v12 = vmul.f32 2.0, %v54_v7  ;;  %v59_v13 = vmul.f32 2.0, %v55_v8  ;;  %p271_p5 = por %p270_p4, %p269_p3 }
  0x2d   :  { %v60_v17 = vsub.f32 1.0, %v56_v10  ;;  %v61_v18 = vsub.f32 1.0, %v57_v11  ;;  %v62_v19 = vsub.f32 1.0, %v58_v12  ;;  %v63_v20 = vsub.f32 1.0, %v59_v13  ;;  %p272_p6 = pnand %p271_p5, %p265_p2 }
  0x2f   :  { %v336_v21 = vmul.f32 %v60_v17, %v43_v9  ;;  %v338_v22 = vmul.f32 %v61_v18, %v44_v14  ;;  %v340_v23 = vmul.f32 %v62_v19, %v45_v15  ;;  %v342_v24 = vmul.f32 %v63_v20, %v46_v16 }
  0x31   :  { %v68_v25 = vand.u32 2147483647, %v336_v21  ;;  %v69_v26 = vand.u32 2147483647, %v338_v22  ;;  %v70_v27 = vand.u32 2147483647, %v340_v23 }
  0x32   :  { %v71_v28 = vand.u32 2147483647, %v342_v24  ;;  %v136_v60 = vmax.f32 %v336_v21, 0.0  ;;  %v137_v0 = vmax.f32 %v338_v22, 0.0  ;;  %v138_v3 = vmax.f32 %v340_v23, 0.0 }
  0x33   :  { %v72_v29 = vsub.f32 0.0, %v68_v25  ;;  %v73_v30 = vsub.f32 0.0, %v69_v26  ;;  %v74_v31 = vsub.f32 0.0, %v70_v27  ;;  %v139_v9 = vmax.f32 %v342_v24, 0.0 }
  0x34   :  { %v75_v32 = vsub.f32 0.0, %v71_v28  ;;  %v120_v26 = vsub.f32 0.0, %v336_v21 }
  0x35   :  { %v76_v33 = vmul.f32 1.442695, %v72_v29  ;;  %v78_v34 = vmul.f32 1.442695, %v73_v30  ;;  %v80_v35 = vmul.f32 1.442695, %v74_v31 }
  0x36   :  { %v82_v36 = vmul.f32 1.442695, %v75_v32  ;;  %v121_v29 = vsub.f32 0.0, %v338_v22  ;;  %v122_v32 = vsub.f32 0.0, %v340_v23 }
  0x37   :  { %196 = vpow2.f32 %v76_v33 }
  0x38   :  { %198 = vpow2.f32 %v78_v34 }
  0x39   :  { %200 = vpow2.f32 %v80_v35  ;;  %v123_v35 = vsub.f32 0.0, %v342_v24 }
  0x3a   :  { %202 = vpow2.f32 %v82_v36  ;;  %v124_v36 = vmax.f32 %v120_v26, 0.0 }
  0x3b   :  { %v127_v21 = vmax.f32 %v123_v35, 0.0 }
  0x41   :  { %v197_v37 = vpop.eup %196 }
  0x42   :  { %v199_v38 = vpop.eup %198  ;;  %v84_v39 = vadd.f32 1.0, %v197_v37  ;;  %v87_v44 = vmul.f32 -0.5, %v197_v37  ;;  %v90_v50 = vand.u32 2147483647, %v197_v37 }
  0x43   :  { %v201_v40 = vpop.eup %200  ;;  %v93_v41 = vadd.f32 1.0, %v199_v38  ;;  %v96_v45 = vmul.f32 -0.5, %v199_v38  ;;  %v99_v52 = vand.u32 2147483647, %v199_v38 }
  0x44   :  { %v203_v42 = vpop.eup %202  ;;  %204 = vlog2.f32 %v84_v39  ;;  %v102_v43 = vadd.f32 1.0, %v201_v40  ;;  %v105_v47 = vmul.f32 -0.5, %v201_v40  ;;  %v88_v48 = vadd.f32 1.0, %v87_v44 }
  0x45   :  { %206 = vlog2.f32 %v93_v41  ;;  %v111_v46 = vadd.f32 1.0, %v203_v42  ;;  %v114_v49 = vmul.f32 -0.5, %v203_v42  ;;  %v97_v51 = vadd.f32 1.0, %v96_v45 }
  0x46   :  { %208 = vlog2.f32 %v102_v43  ;;  %v106_v53 = vadd.f32 1.0, %v105_v47  ;;  %v108_v54 = vand.u32 2147483647, %v201_v40  ;;  %v89_v55 = vmul.f32 %v197_v37, %v88_v48 }
  0x47   :  { %210 = vlog2.f32 %v111_v46  ;;  %v115_v56 = vadd.f32 1.0, %v114_v49  ;;  %vm91_vm0 = vcmp.lt.f32.partialorder %v90_v50, 0.0004427343  ;;  %v98_v58 = vmul.f32 %v199_v38, %v97_v51 }
  0x48   :  { %v117_v59 = vand.u32 2147483647, %v203_v42  ;;  %vm100_vm1 = vcmp.lt.f32.partialorder %v99_v52, 0.0004427343  ;;  %v107_v63 = vmul.f32 %v201_v40, %v106_v53  ;;  %vm109_vm2 = vcmp.lt.f32.partialorder %v108_v54, 0.0004427343 }
  0x49   :  { %v116_v6 = vmul.f32 %v203_v42, %v115_v56  ;;  %v125_v38 = vmax.f32 %v121_v29, 0.0  ;;  %v126_v39 = vmax.f32 %v122_v32, 0.0 }
  0x4a   :  { %vm118_vm3 = vcmp.lt.f32.partialorder %v117_v59, 0.0004427343 }
  0x4e   :  { %v205_v57 = vpop.eup %204 }
  0x4f   :  { %v207_v61 = vpop.eup %206  ;;  %v86_v62 = vmul.f32 0.6931472, %v205_v57 }
  0x50   :  { %v209_v1 = vpop.eup %208  ;;  %v95_v2 = vmul.f32 0.6931472, %v207_v61 }
  0x51   :  { %v92_v4 = vsel %vm91_vm0, %v89_v55, %v86_v62  ;;  %v104_v5 = vmul.f32 0.6931472, %v209_v1  ;;  %v211_v7 = vpop.eup %210 }
  0x52   :  { %v101_v8 = vsel %vm100_vm1, %v98_v58, %v95_v2  ;;  %v140_v10 = vadd.f32 %v136_v60, %v92_v4  ;;  %v113_v12 = vmul.f32 0.6931472, %v211_v7  ;;  %v128_v40 = vadd.f32 %v124_v36, %v92_v4 }
  0x53   :  { %v110_v11 = vsel %vm109_vm2, %v107_v63, %v104_v5  ;;  %v141_v13 = vadd.f32 %v137_v0, %v101_v8  ;;  %v129_v41 = vadd.f32 %v125_v38, %v101_v8 }
  0x54   :  { %v142_v14 = vadd.f32 %v138_v3, %v110_v11  ;;  %v144_v15 = vsub.f32 0.0, %v140_v10  ;;  %v119_v16 = vsel %vm118_vm3, %v116_v6, %v113_v12  ;;  %v130_v22 = vadd.f32 %v126_v39, %v110_v11 }
  0x55   :  { %v145_v17 = vsub.f32 0.0, %v141_v13  ;;  %v143_v18 = vadd.f32 %v139_v9, %v119_v16  ;;  %v131_v42 = vadd.f32 %v127_v21, %v119_v16  ;;  %v132_v43 = vsub.f32 0.0, %v128_v40 }
  0x56   :  { %v146_v19 = vsub.f32 0.0, %v142_v14  ;;  %v148_v20 = vmul.f32 0.5, %v144_v15  ;;  %v133_v23 = vsub.f32 0.0, %v129_v41  ;;  %v134_v46 = vsub.f32 0.0, %v130_v22 }
  0x57   :  { %v149_v25 = vmul.f32 0.5, %v145_v17  ;;  %v147_v27 = vsub.f32 0.0, %v143_v18  ;;  %v135_v48 = vsub.f32 0.0, %v131_v42 }
  0x58   :  { %v150_v28 = vmul.f32 0.5, %v146_v19  ;;  %v152_v30 = vmul.f32 1.442695, %v148_v20 }
  0x59   :  { %v154_v31 = vmul.f32 1.442695, %v149_v25  ;;  %v151_v33 = vmul.f32 0.5, %v147_v27 }
  0x5a   :  { %v156_v34 = vmul.f32 1.442695, %v150_v28  ;;  %212 = vpow2.f32 %v152_v30 }
  0x5b   :  { %214 = vpow2.f32 %v154_v31  ;;  %v158_v37 = vmul.f32 1.442695, %v151_v33 }
  0x5c   :  { %216 = vpow2.f32 %v156_v34 }
  0x5d   :  { %218 = vpow2.f32 %v158_v37 }
  0x64   :  { %v213_v44 = vpop.eup %212 }
  0x65   :  { %v215_v45 = vpop.eup %214  ;;  %v160_v47 = vsub.f32 0.0, %v213_v44 }
  0x66   :  { %v217_v24 = vpop.eup %216  ;;  %v161_v49 = vsub.f32 0.0, %v215_v45 }
  0x67   :  { %v219_v50 = vpop.eup %218  ;;  %v162_v51 = vsub.f32 0.0, %v217_v24  ;;  %v164_v52 = vmul.f32 %v160_v47, %v132_v43 }
  0x68   :  { %v163_v53 = vsub.f32 0.0, %v219_v50  ;;  %v165_v54 = vmul.f32 %v161_v49, %v133_v23 }
  0x69   :  { %v166_v55 = vmul.f32 %v162_v51, %v134_v46 }
  0x6a   :  { %v167_v56 = vmul.f32 %v163_v53, %v135_v48  ;;  %v169_v57 = vadd.f32 %v165_v54, %v164_v52 }
  0x6c   :  { %v170_v58 = vadd.f32 %v169_v57, %v166_v55 }
  0x6e   :  { %v171_v59 = vadd.f32 %v170_v58, %v167_v56 }
  0x70   :  { %173 = vst [vmem:[#allocation7] sm:$0xff] %v171_v59 }
  0x71   :  { %275 = shalt.err (!%p272_p6)
}
  0x72   :  { %s276_s10 = scalar_lea.hbm %s370_s2, 128 }
  0x73   :  { %p277_p7 = scmp.ne.s32.totalorder %s370_s2, %s276_s10  ;;  %p280_p8 = scmp.lt.u32.totalorder %s276_s10, %s370_s2 }
  0x75   :  { %p282_p9 = pnand %p280_p8, %p277_p7 }
  0x77   :  { %285 = shalt.err (!%p282_p9)
}
  0x78   :  { %183 = dma.vmem_to_hbm [thread:$0]  %s181_s6, 128, %s370_s2, [#allocation4]  }
  0x79   :  { %290 = dma.done.wait [#allocation4], 128  }
  0x7a   :  { %291 = vsyncadd [#allocation4], 4294967168 }
  0x7b   :  { %187 = vsyncpa [#allocation3], 1 }
  0x7c   :  { %188 = vsyncpa [#allocation6], 1 }
  0x7d   :  { %189 = vsyncpa [#allocation4], 1 }

</bundles_post_ra>
